<compile_context>
chip_gen: v6e
topology: v6e:2x2x1
jax: 0.10.0
libtpu: 0.0.40
codegen_flags: <defaults>
</compile_context>

<pallas_src>
import functools

import jax
import jax.numpy as jnp
from jax.experimental import pallas as pl
from jax.experimental.pallas import tpu as pltpu

LANE = 128  # lane width; every packed region starts at a multiple of this.


def _mha_kernel(x_ref, c_ref, o_ref, *, seq, num_heads, head_dim):
    """Multi-head self-attention for ONE batch (one grid step).

    x_ref: (S, D)        this batch's input rows
    c_ref: (rows, 5*128) packed static constants (see prepare_consts)
    o_ref: (S, D)        output rows
    """
    S, H, hd = seq, num_heads, head_dim
    D = H * hd
    R = H * S  # replicated key rows / score lanes, ordered (head, key)

    x = x_ref[...]                                            # (S, D)

    # ---- Fused QKV projection (1/sqrt(hd) already folded into Q cols). ----
    w_qkv = c_ref[0:D, 0:3 * D]                               # (D, 3D)
    b_qkv = c_ref[D:D + S, 0:3 * D]                           # (S, 3D) pre-broadcast
    qkv = jnp.dot(x, w_qkv, preferred_element_type=jnp.float32) + b_qkv
    q = qkv[:, :D]                                            # (S, D), pre-scaled
    k = qkv[:, D:2 * D]                                       # (S, D)
    v = qkv[:, 2 * D:]                                        # (S, D)

    # ---- Replicate K/V once per head on the MXU, then head-mask. ----
    p_sel = c_ref[0:R, 4 * LANE:4 * LANE + S]                 # (R, S) row selector
    mask_kv = c_ref[0:R, 2 * LANE:2 * LANE + D]               # (R, D) 0/1 head mask
    k_blk = jnp.dot(p_sel, k, preferred_element_type=jnp.float32) * mask_kv
    v_blk = jnp.dot(p_sel, v, preferred_element_type=jnp.float32) * mask_kv

    # ---- Scores for all heads in ONE MXU push (NT matmul, K untransposed).
    # s[i, h*S + j] = <q_head_h(i), k_head_h(j)>
    s = pl.dot(q, k_blk, trans_b=True)                        # (S, R) f32

    # ---- Per-head softmax over blocks of S lanes.
    # A global row max is a valid (shift-invariant) stabilizer for every block.
    # If one head's scores trail another's by more than ~88, that head's block
    # underflows to 0 and the clamp below yields a 0 context for it instead of
    # NaN (acceptable here; use a segmented max if that ever matters).
    m = jnp.max(s, axis=-1, keepdims=True)                    # (S, 1)
    p = jnp.exp(s - m)                                        # (S, R)
    ones_blk = c_ref[0:R, LANE:LANE + R]                      # (R, R) block-diag ones
    denom = jnp.dot(p, ones_blk, preferred_element_type=jnp.float32)
    denom = jnp.maximum(denom, 1e-30)  # keep: guards 0 * inf -> NaN
    p = p * pl.reciprocal(denom, approx=True)

    # ---- Context (already head-concatenated) + output projection. ----
    ctx = jnp.dot(p, v_blk, preferred_element_type=jnp.float32)   # (S, D)
    w_o = c_ref[0:D, 3 * LANE:3 * LANE + D]                   # (D, D)
    b_o = c_ref[D + S:D + 2 * S, 3 * LANE:3 * LANE + D]       # (S, D) pre-broadcast
    out = jnp.dot(ctx, w_o, preferred_element_type=jnp.float32) + b_o
    o_ref[...] = out.astype(o_ref.dtype)


def prepare_consts(params, num_heads, seq):
    """One-time parameter prep: pack every static operand into one lane-aligned
    f32 slab so the kernel does zero constant construction and one DMA.

    Layout (rows = max(H*S, D+2S), lanes = 5*128):
      [0:D,      0:3D]        Wqkv^T = [Wq^T*scale | Wk^T | Wv^T]
      [D:D+S,    0:3D]        bqkv  (scale folded into bq), broadcast to S rows
      [0:R,   128:128+R]      block-diagonal ones (softmax denominator)
      [0:R,   256:256+D]      per-head K/V mask (0/1)
      [0:D,   384:384+D]      Wo^T
      [D+S:D+2S, 384:384+D]   bo, broadcast to S rows
      [0:R,   512:512+S]      head-replication selector P_sel
    """
    D = params['wq_t'].shape[0]
    hd = D // num_heads
    S = seq
    R = num_heads * S
    assert 3 * D <= LANE and R <= LANE and D % 8 == 0 and S % 8 == 0, (
        "packed-constant layout assumes small d_model/seq; see module TODO")
    rows = max(R, D + 2 * S)
    scale = 1.0 / float(hd) ** 0.5

    c = jnp.zeros((rows, 5 * LANE), jnp.float32)

    wqkv = jnp.concatenate(
        [params['wq_t'] * scale, params['wk_t'], params['wv_t']], axis=1)    # (D, 3D)
    bqkv = jnp.concatenate(
        [params['bq'] * scale, params['bk'], params['bv']], axis=1)          # (1, 3D)
    c = c.at[0:D, 0:3 * D].set(wqkv)
    c = c.at[D:D + S, 0:3 * D].set(jnp.tile(bqkv, (S, 1)))

    r = jnp.arange(R)
    ones_blk = (r[:, None] // S == r[None, :] // S).astype(jnp.float32)      # (R, R)
    c = c.at[0:R, LANE:LANE + R].set(ones_blk)

    mask_kv = (r[:, None] // S ==
               jnp.arange(D)[None, :] // hd).astype(jnp.float32)             # (R, D)
    c = c.at[0:R, 2 * LANE:2 * LANE + D].set(mask_kv)

    c = c.at[0:D, 3 * LANE:3 * LANE + D].set(params['wo_t'])
    c = c.at[D + S:D + 2 * S, 3 * LANE:3 * LANE + D].set(
        jnp.tile(params['bo'], (S, 1)))

    p_sel = (r[:, None] % S == jnp.arange(S)[None, :]).astype(jnp.float32)   # (R, S)
    c = c.at[0:R, 4 * LANE:4 * LANE + S].set(p_sel)
    return c


def shared_memory_layer(x, consts, num_heads):
    """Pallas implementation of SharedMemoryLayer.forward (self-attention)."""
    B, S, D = x.shape
    assert D % num_heads == 0
    head_dim = D // num_heads

    xf = x.reshape(B * S, D)  # free leading-dim merge

    kernel = functools.partial(_mha_kernel, seq=S, num_heads=num_heads,
                               head_dim=head_dim)
    out = pl.pallas_call(
        kernel,
        out_shape=jax.ShapeDtypeStruct((B * S, D), x.dtype),
        grid=(B,),  # one batch per step; "parallel" -> both TCs on v7x
        in_specs=[
            pl.BlockSpec((S, D), lambda b: (b, 0)),        # this batch's rows
            pl.BlockSpec(consts.shape, lambda b: (0, 0)),  # static slab, one DMA
        ],
        out_specs=pl.BlockSpec((S, D), lambda b: (b, 0)),
        compiler_params=pltpu.CompilerParams(
            dimension_semantics=("parallel",)),
    )(xf, consts)

    return out.reshape(B, S, D)


def mha_reference(x, params, num_heads):
    """Pure-JAX reference matching torch.nn.MultiheadAttention forward."""
    B, S, D = x.shape
    hd = D // num_heads
    q = x @ params['wq_t'] + params['bq']
    k = x @ params['wk_t'] + params['bk']
    v = x @ params['wv_t'] + params['bv']

    def split(t):  # (B, S, D) -> (B, H, S, hd)
        return t.reshape(B, S, num_heads, hd).transpose(0, 2, 1, 3)

    qh, kh, vh = split(q), split(k), split(v)
    s = jnp.einsum('bhqd,bhkd->bhqk', qh, kh) / (hd ** 0.5)
    p = jax.nn.softmax(s, axis=-1)
    ctx = jnp.einsum('bhqk,bhkd->bhqd', p, vh)
    ctx = ctx.transpose(0, 2, 1, 3).reshape(B, S, D)
    return ctx @ params['wo_t'] + params['bo']


def init_params(key, d_model):
    """Deterministic synthetic init of MHA parameters (shapes match
    nn.MultiheadAttention(d_model, 8): in_proj (3D, D), out_proj (D, D))."""
    ks = jax.random.split(key, 4)
    scale = 0.1
    return {
        'wq_t': scale * jax.random.normal(ks[0], (d_model, d_model), jnp.float32),
        'wk_t': scale * jax.random.normal(ks[1], (d_model, d_model), jnp.float32),
        'wv_t': scale * jax.random.normal(ks[2], (d_model, d_model), jnp.float32),
        'wo_t': scale * jax.random.normal(ks[3], (d_model, d_model), jnp.float32),
        'bq': jnp.zeros((1, d_model), jnp.float32) + 0.01,
        'bk': jnp.zeros((1, d_model), jnp.float32) - 0.01,
        'bv': jnp.zeros((1, d_model), jnp.float32) + 0.02,
        'bo': jnp.zeros((1, d_model), jnp.float32) + 0.03,
    }


if __name__ == "__main__":
    B, S, D = 2, 8, 32       # batch of agents, memory slots (seq), d_model
    NUM_HEADS = 8

    key = jax.random.PRNGKey(0)
    k_x, k_p = jax.random.split(key)
    x = jax.random.normal(k_x, (B, S, D), jnp.float32)
    params = init_params(k_p, D)

    # One-time parameter prep (fusion, scale folding, static masks/constants).
    consts = jax.block_until_ready(prepare_consts(params, NUM_HEADS, S))

    fwd = jax.jit(functools.partial(shared_memory_layer, num_heads=NUM_HEADS))
    out = jax.block_until_ready(fwd(x, consts))

    ref = mha_reference(x, params, NUM_HEADS)
    assert out.shape == (B, S, D)
    # Tolerance accounts for the approximate (EUP) reciprocal in the softmax.
    assert jnp.allclose(out, ref, rtol=1e-2, atol=1e-2), "mismatch vs reference"

    print("KERNEL_OK")
</pallas_src>

<mosaic_0001>
module attributes {stable_mosaic.version = 11 : i64} {
  func.func @_mha_kernel(%arg0: i32, %arg1: memref<8x32xf32, #tpu.memory_space<vmem>>, %arg2: memref<64x640xf32, #tpu.memory_space<vmem>>, %arg3: memref<8x32xf32, #tpu.memory_space<vmem>>) attributes {dimension_semantics = [#tpu.dimension_semantics<parallel>], iteration_bounds = array<i64: 2>, scalar_prefetch = 0 : i64, scratch_operands = 0 : i64, tpu.core_type = #tpu.core_type<tc>, window_params = [{transform_indices = @transform_0, window_bounds = array<i64: 8, 32>}, {pipeline_mode = #tpu.pipeline_mode<synchronous>, transform_indices = @transform_1, window_bounds = array<i64: 64, 640>}, {transform_indices = @transform_2, window_bounds = array<i64: 8, 32>}]} {
    %c0 = arith.constant 0 : index
    %c0_0 = arith.constant 0 : index
    %0 = vector.load %arg1[%c0, %c0_0] : memref<8x32xf32, #tpu.memory_space<vmem>>, vector<8x32xf32>
    %c0_1 = arith.constant 0 : index
    %c0_2 = arith.constant 0 : index
    %1 = vector.load %arg2[%c0_1, %c0_2] : memref<64x640xf32, #tpu.memory_space<vmem>>, vector<32x96xf32>
    %c32 = arith.constant 32 : index
    %c0_3 = arith.constant 0 : index
    %2 = vector.load %arg2[%c32, %c0_3] : memref<64x640xf32, #tpu.memory_space<vmem>>, vector<8x96xf32>
    %cst = arith.constant dense<0.000000e+00> : vector<8x96xf32>
    %3 = tpu.matmul %0, %1, %cst {dimension_numbers = #tpu.dot_dimension_numbers<[1], [0], [0], [1], [0, 0, 1, 1], [], []>} : vector<8x32xf32>, vector<32x96xf32>, vector<8x96xf32> -> vector<8x96xf32>
    %4 = arith.addf %3, %2 : vector<8x96xf32>
    %5 = vector.extract_strided_slice %4 {offsets = [0, 0], sizes = [8, 32], strides = [1, 1]} : vector<8x96xf32> to vector<8x32xf32>
    %6 = vector.extract_strided_slice %4 {offsets = [0, 32], sizes = [8, 32], strides = [1, 1]} : vector<8x96xf32> to vector<8x32xf32>
    %7 = vector.extract_strided_slice %4 {offsets = [0, 64], sizes = [8, 32], strides = [1, 1]} : vector<8x96xf32> to vector<8x32xf32>
    %c0_4 = arith.constant 0 : index
    %c512 = arith.constant 512 : index
    %8 = vector.load %arg2[%c0_4, %c512] : memref<64x640xf32, #tpu.memory_space<vmem>>, vector<64x8xf32>
    %c0_5 = arith.constant 0 : index
    %c256 = arith.constant 256 : index
    %9 = vector.load %arg2[%c0_5, %c256] : memref<64x640xf32, #tpu.memory_space<vmem>>, vector<64x32xf32>
    %cst_6 = arith.constant dense<0.000000e+00> : vector<64x32xf32>
    %10 = tpu.matmul %8, %6, %cst_6 {dimension_numbers = #tpu.dot_dimension_numbers<[1], [0], [0], [1], [0, 0, 1, 1], [], []>} : vector<64x8xf32>, vector<8x32xf32>, vector<64x32xf32> -> vector<64x32xf32>
    %11 = arith.mulf %10, %9 : vector<64x32xf32>
    %cst_7 = arith.constant dense<0.000000e+00> : vector<64x32xf32>
    %12 = tpu.matmul %8, %7, %cst_7 {dimension_numbers = #tpu.dot_dimension_numbers<[1], [0], [0], [1], [0, 0, 1, 1], [], []>} : vector<64x8xf32>, vector<8x32xf32>, vector<64x32xf32> -> vector<64x32xf32>
    %13 = arith.mulf %12, %9 : vector<64x32xf32>
    %cst_8 = arith.constant dense<0.000000e+00> : vector<8x64xf32>
    %14 = tpu.matmul %5, %11, %cst_8 {dimension_numbers = #tpu.dot_dimension_numbers<[1], [1], [0], [0], [0, 0, 1, 0], [], []>} : vector<8x32xf32>, vector<64x32xf32>, vector<8x64xf32> -> vector<8x64xf32>
    %cst_9 = arith.constant dense<0xFF800000> : vector<8xf32>
    %15 = vector.multi_reduction <maximumf>, %14, %cst_9 [1] : vector<8x64xf32> to vector<8xf32>
    %16 = vector.shape_cast %15 : vector<8xf32> to vector<8x1xf32>
    %17 = vector.broadcast %16 : vector<8x1xf32> to vector<8x64xf32>
    %18 = arith.subf %14, %17 : vector<8x64xf32>
    %19 = math.exp %18 : vector<8x64xf32>
    %c0_10 = arith.constant 0 : index
    %c128 = arith.constant 128 : index
    %20 = vector.load %arg2[%c0_10, %c128] : memref<64x640xf32, #tpu.memory_space<vmem>>, vector<64x64xf32>
    %cst_11 = arith.constant dense<0.000000e+00> : vector<8x64xf32>
    %21 = tpu.matmul %19, %20, %cst_11 {dimension_numbers = #tpu.dot_dimension_numbers<[1], [0], [0], [1], [0, 0, 1, 1], [], []>} : vector<8x64xf32>, vector<64x64xf32>, vector<8x64xf32> -> vector<8x64xf32>
    %cst_12 = arith.constant 1.000000e-30 : f32
    %22 = vector.broadcast %cst_12 : f32 to vector<8x64xf32>
    %23 = arith.maximumf %21, %22 : vector<8x64xf32>
    %24 = tpu.reciprocal %23 {approx = true} : vector<8x64xf32> -> vector<8x64xf32>
    %25 = arith.mulf %19, %24 : vector<8x64xf32>
    %cst_13 = arith.constant dense<0.000000e+00> : vector<8x32xf32>
    %26 = tpu.matmul %25, %13, %cst_13 {dimension_numbers = #tpu.dot_dimension_numbers<[1], [0], [0], [1], [0, 0, 1, 1], [], []>} : vector<8x64xf32>, vector<64x32xf32>, vector<8x32xf32> -> vector<8x32xf32>
    %c0_14 = arith.constant 0 : index
    %c384 = arith.constant 384 : index
    %27 = vector.load %arg2[%c0_14, %c384] : memref<64x640xf32, #tpu.memory_space<vmem>>, vector<32x32xf32>
    %c40 = arith.constant 40 : index
    %c384_15 = arith.constant 384 : index
    %28 = vector.load %arg2[%c40, %c384_15] : memref<64x640xf32, #tpu.memory_space<vmem>>, vector<8x32xf32>
    %cst_16 = arith.constant dense<0.000000e+00> : vector<8x32xf32>
    %29 = tpu.matmul %26, %27, %cst_16 {dimension_numbers = #tpu.dot_dimension_numbers<[1], [0], [0], [1], [0, 0, 1, 1], [], []>} : vector<8x32xf32>, vector<32x32xf32>, vector<8x32xf32> -> vector<8x32xf32>
    %30 = arith.addf %29, %28 : vector<8x32xf32>
    %c0_17 = arith.constant 0 : index
    %c0_18 = arith.constant 0 : index
    %31 = vector.load %arg3[%c0_17, %c0_18] : memref<8x32xf32, #tpu.memory_space<vmem>>, vector<8x32xf32>
    tpu.vector_store %arg3[%c0_17, %c0_18], %30 {strides = array<i32>} : memref<8x32xf32, #tpu.memory_space<vmem>>, vector<8x32xf32>,
    return
  }
  func.func @transform_0(%arg0: i32) -> (i32, i32) {
    %c0_i32 = arith.constant 0 : i32
    %c0_i32_0 = arith.constant 0 : i32
    return %arg0, %c0_i32 : i32, i32
  }
  func.func @transform_1(%arg0: i32) -> (i32, i32) {
    %c0_i32 = arith.constant 0 : i32
    %c0_i32_0 = arith.constant 0 : i32
    %c0_i32_1 = arith.constant 0 : i32
    return %c0_i32, %c0_i32_0 : i32, i32
  }
  func.func @transform_2(%arg0: i32) -> (i32, i32) {
    %c0_i32 = arith.constant 0 : i32
    %c0_i32_0 = arith.constant 0 : i32
    return %arg0, %c0_i32 : i32, i32
  }
}

</mosaic_0001>

<bundles_post_ra>
// kernel: shared_memory_layer.1
= control target key start
LH: loop header
LB: loop body
LE: loop exit
PB: predicated region body
PF: predicated region fallthrough
CT: control target
= control target key end

     0   :  { %7 = vsyncpa [#allocation3], 0  ;;  %s1655_s0 = inlined_call_operand.hbm [shape: f32[16,32], index: 0, kind: input, shape index: {}]   ;;  %s1656_s1 = inlined_call_operand.hbm [shape: f32[64,640], index: 1, kind: input, shape index: {}]   ;;  %s1657_s2 = inlined_call_operand.hbm [shape: f32[16,32], index: 2, kind: output, shape index: {}]  }
   0x1   :  { %9 = vsyncpa [#allocation3 + $0x1], 0 }
   0x2   :  { %10 = vsyncpa [#allocation6], 0 }
   0x3   :  { %11 = vsyncpa [#allocation4], 0 }
   0x4   :  { %13 = vsyncpa [#allocation4 + $0x1], 0  ;;  %s1381_s9 = smov 0   ;;  %s1383_s10 = smov 0  }
   0x5   :  { %s1385_s11 = smov 0   ;;  %s1387_s12 = smov 0  }
   0x6 LB: > { %s1402_s13 = sadd.s32 4294967295, %s1355_s12   ;;  %s961_s14 = sadd.s32 4294967294, %s1355_s12   ;;  %s1355_s12 = sphi %s1387_s12, %s1679_s12   ;;  %s1351_s11 = sphi %s1385_s11, %s1678_s11   ;;  %s1347_s10 = sphi %s1383_s10, %s1677_s10   ;;  %s1343_s9 = sphi %s1381_s9, %s1676_s9  }
   0x7   : > { %p39_p0 = scmp.ne.s32.totalorder %s1347_s10, %s1343_s9  ;;  %p1658_p1 = scmp.eq.s32.totalorder %s1402_s13, 0 }
   0x8   : > { %p90_p3 = scmp.eq.s32.totalorder %s961_s14, 1  ;;  %p962_p5 = scmp.ge.s32.totalorder %s1355_s12, 1 }
   0x9   : > { %p1411_p4 = por %p1658_p1, %p39_p0  ;;  %p97_p7 = scmp.lt.s32.totalorder %s1355_s12, 3 }
   0xa   : > { %p1416_p6 = por %p90_p3, %p39_p0  ;;  %s1357_s18 = smov [#allocation5]  }
   0xb   : > { %s1662_s15 = scalar_select %p1411_p4, 1, 0 }
   0xc   : > { %s1663_s16 = scalar_select %p1416_p6, 1, 0 }
   0xd   : > { %p1421_p8 = pnand %p962_p5, %p97_p7  ;;  %s109_s19 = sshll.u32 %s1357_s18, 4  ;;  %s110_s19 = int_to_ptr.vmem [resolvable:$true] %s109_s19 }
   0xe   : > { %s1435_s21 = sadd.s32 1, %s1355_s12   ;;  %s26_s22 = sadd.s32 1, %s1351_s11 }
   0xf   : > { %s1664_s17 = scalar_select %p1421_p8, 1, 0 }
  0x10   : > { %p1174_p9 = pneg %p1421_p8  ;;  %s23_s23 = ssub.s32 %s1355_s12, %s1435_s21 }
  0x11   : > { %s1244_s24 = scalar_lea.vmem %s110_s19, 5120  ;;  %p1252_p5 = scmp.lt.s32.totalorder %s110_s19, %s110_s19 }
  0x12   : > { %p1430_p11 = pnand %p1174_p9, %p1658_p1  ;;  %p1245_p13 = scmp.ne.s32.totalorder %s110_s19, %s1244_s24 }
  0x13   : > { %p1253_p7 = scmp.lt.s32.totalorder %s1244_s24, %s1244_s24 }
  0x14   : > { %p1235_p12 = pneg %p1430_p11 }
  0x15   : > { %p1254_p10 = por %p1253_p7, %p1252_p5 }
  0x16   : > { %p1247_p0 = pnand %p1245_p13, %p1235_p12 }
  0x18   : > { %p1248_p3 = pneg %p1247_p0 }
  0x1a   : > { %p1255_p2 = pnand %p1254_p10, %p1248_p3 }
  0x1c   : > { %1258 = shalt.err (!%p1255_p2)
}
  0x1d   : > { %s1358_s25 = smov 640   ;;  %s1359_s26 = smov 40  }
  0x1e   : > { %1177 = dma.hbm_to_vmem [thread:$0]  (!%p1430_p11), %s1656_s1, 5120, %s110_s19, [#allocation6], %s1358_s25, %s1358_s25, %s1359_s26  }
  0x1f   : > { %p24_p9 = scmp.eq.s32.totalorder %s23_s23, 0  ;;  %p33_p12 = scmp.ne.s32.totalorder %s1351_s11, %s1347_s10 }
  0x20   : > { %p34_p10 = scmp.eq.s32.totalorder %s1355_s12, 0  ;;  %p1187_p2 = scmp.lt.s32.totalorder %s1355_s12, 2 }
  0x21   : > { %s1452_s29 = scalar_select %p24_p9, %s1351_s11, %s26_s22  }
  0x22   : > { %p35_p13 = por %p34_p10, %p33_p12  ;;  %p1666_p0 = scmp.eq.s32.totalorder %s1402_s13, 1 }
  0x23   : > { %s123_s3 = sand.u32 1, %s1351_s11   ;;  %s966_s4 = sshll.u32 %s1355_s12, 7 }
  0x24   : > { %p1456_p3 = por %p1666_p0, %p33_p12  ;;  %s965_s5 = sshll.u32 %s123_s3, 3 }
  0x25   : > { %s1465_s8 = scalar_lea.hbm %s1655_s0, %s966_s4  ;;  %s127_s14 = scalar_lea.vmem [#allocation2], %s965_s5 }
  0x26   : > { %s1667_s30 = scalar_select %p1456_p3, 1, 0 }
  0x27   : > { %s134_s18 = sshll.u32 %s127_s14, 4  ;;  %p1467_p11 = pnand %p1187_p2, %p35_p13  ;;  %s135_s18 = int_to_ptr.vmem [resolvable:$true] %s134_s18 }
  0x28   : > { %s124_s20 = scalar_lea.sflag [#allocation3], %s123_s3  ;;  %s1259_s22 = scalar_lea.hbm %s1465_s8, 128 }
  0x29   : > { %p1260_p5 = scmp.ne.s32.totalorder %s1465_s8, %s1259_s22  ;;  %p1261_p7 = pneg %p1467_p11 }
  0x2a   : > { %s1264_s25 = scalar_lea.hbm %s1655_s0, 256  ;;  %p1265_p10 = scmp.lt.s32.totalorder %s1465_s8, %s1655_s0 }
  0x2b   : > { %p1262_p9 = pnand %p1261_p7, %p1260_p5  ;;  %p1266_p2 = scmp.lt.s32.totalorder %s1264_s25, %s1259_s22 }
  0x2d   : > { %p1263_p12 = pneg %p1262_p9  ;;  %p1267_p13 = por %p1266_p2, %p1265_p10 }
  0x2f   : > { %p1268_p0 = pnand %p1267_p13, %p1263_p12 }
  0x31   : > { %1271 = shalt.err (!%p1268_p0)
}
  0x32   : > { %s1272_s28 = scalar_lea.vmem %s135_s18, 128  ;;  %s1360_s3 = smov [#allocation2]  }
  0x33   : > { %p1273_p1 = scmp.ne.s32.totalorder %s135_s18, %s1272_s28  ;;  %s1277_s4 = sshll.u32 %s1360_s3, 4  ;;  %s1278_s4 = int_to_ptr.vmem [resolvable:$false] %s1277_s4 }
  0x34   : > { %s1279_s5 = scalar_lea.vmem %s1278_s4, 256  ;;  %p1280_p5 = scmp.lt.s32.totalorder %s135_s18, %s1278_s4 }
  0x35   : > { %p1275_p6 = pnand %p1273_p1, %p1261_p7  ;;  %p1281_p9 = scmp.lt.s32.totalorder %s1279_s5, %s1272_s28 }
  0x37   : > { %p1276_p3 = pneg %p1275_p6  ;;  %p1282_p4 = por %p1281_p9, %p1280_p5 }
  0x39   : > { %p1283_p8 = pnand %p1282_p4, %p1276_p3 }
  0x3b   : > { %1286 = shalt.err (!%p1283_p8)
}
  0x3c   : > { %1181 = dma.hbm_to_vmem [thread:$0]  (!%p1467_p11), %s1465_s8, 128, %s135_s18, %s124_s20  }
  0x3d   : > { %p1669_p12 = scmp.ne.s32.totalorder %s1664_s17, 0 }
  0x3e   : > { %s1488_s6 = sand.u32 (!%p1669_p12), 1, %s1347_s10   ;;  %p1670_p1 = scmp.ne.s32.totalorder (!%p1669_p12), %s1662_s15, 0 }
  0x3f   : > { %143 = sbr.rel (%p1669_p12) target bundleno = 1593 (0x639), region = 28  ;;  %s968_s7 = sshll.u32 (!%p1669_p12), %s1488_s6, 3 }
  0x40   : > { %s146_s14 = scalar_lea.sflag (!%p1669_p12), [#allocation3], %s1488_s6  ;;  %s149_s22 = scalar_lea.vmem (!%p1669_p12), [#allocation2], %s968_s7 }
  0x44   : > { %1330 = dma.done.wait (%p1670_p1), %s146_s14, 128  }
  0x45   : > { %1332 = vsyncadd (%p1670_p1), %s146_s14, 4294967168  ;;  %p1671_p4 = scmp.eq.s32.totalorder %s1402_s13, 0 }
  0x47   : > { %1334 = dma.done.wait (%p1671_p4), [#allocation6], 5120   ;;  %p1672_p6 = pmov %p1671_p4 }
  0x48   : > { %v1361_v0 = vmov 0.0   ;;  %vm1362_vm0 = vmmov 0   ;;  %v178_v1 = vld [vmem:[#allocation5 + $0x78] sm:$0xff]  ;;  %v177_v2 = vld [vmem:[#allocation5 + $0x50] sm:$0xff]  ;;  %v176_v3 = vld [vmem:[#allocation5 + $0x28] sm:$0xff]  ;;  %vm180_vm1 = vcmask 261120  }
  0x49   : > { %1336 = vsyncadd (%p1672_p6), [#allocation6], 4294962176  ;;  %1059 = vmatprep.subr.mxu0 %v1361_v0  ;;  %1067 = vmatprep.mubr.msk.f32.mxu0 %vm1362_vm0, %v1361_v0  ;;  %v175_v4 = vld [vmem:[#allocation5] sm:$0xff]  ;;  %v174_v5 = vld [vmem:[%s149_s22] sm:$0xff]  ;;  %vm274_vm2 = vcmask 64512   ;;  %s1363_s15 = smov 64  }
  0x4a   : > { %1060 = vmatpush3.msra.mxu0 %v178_v1  ;;  %v254_v6 = vld [vmem:[#allocation5 + $0x20] sm:$0xff]  ;;  %s1364_s17 = smov 96   ;;  %v255_v13 = vld [vmem:[#allocation5 + $0x48] sm:$0xff]  ;;  %v256_v14 = vld [vmem:[#allocation5 + $0x70] sm:$0xff]  ;;  %vm624_vm3 = vcmask 523264   ;;  %s1001_s8 = sshll.u32 %s1402_s13, 7 }
  0x4b   : > { %1061 = vmatprep.subr.mxu0 %v1361_v0  ;;  %1072 = vmatprep.mubr.msk.f32.mxu1 %vm274_vm2, %v254_v6  ;;  %v179_v7 = vld [vmem:[#allocation5 + $0xa0] sm:$0xff]  ;;  %v257_v15 = vld [vmem:[#allocation5 + $0x98] sm:$0xff]  ;;  %v259_v17 = vld [vmem:[#allocation5 + $0xe8] sm:$0xff]  ;;  %s173_s18 = scalar_lea.vmem [#allocation7], %s968_s7  ;;  %s1617_s24 = scalar_lea.hbm %s1657_s2, %s1001_s8 }
  0x4c   : > { %1062 = vmatpush3.msra.mxu0 %v177_v2  ;;  %v258_v16 = vld [vmem:[#allocation5 + $0xc0] sm:$0xff]  ;;  %v260_v18 = vld [vmem:[#allocation5 + $0x110] sm:$0xff]  ;;  %v261_v19 = vld [vmem:[#allocation5 + $0x138] sm:$0xff]  ;;  %s881_s19 = sshll.u32 %s173_s18, 4  ;;  %s868_s25 = scalar_lea.sflag [#allocation4], %s1488_s6  ;;  %s882_s19 = int_to_ptr.vmem [resolvable:$true] %s881_s19 }
  0x4d   : > { %1063 = vmatprep.subr.mxu0 %v1361_v0  ;;  %v1535_v26 = vld [vmem:[#allocation5 + $0x128] sm:$0xff]  ;;  %v1538_v29 = vld [vmem:[#allocation5 + $0x100] sm:$0xff]  ;;  %v1543_v32 = vld [vmem:[#allocation5 + $0xd8] sm:$0xff]  ;;  %s1287_s26 = scalar_lea.vmem %s882_s19, 128  ;;  %p1673_p3 = scmp.ne.s32.totalorder %s1667_s30, 0 }
  0x4e   : > { %1064 = vmatpush3.msra.mxu0 %v176_v3  ;;  %v1548_v34 = vld [vmem:[#allocation5 + $0xb0] sm:$0xff]  ;;  %v1553_v36 = vld [vmem:[#allocation5 + $0x88] sm:$0xff]  ;;  %v1558_v38 = vld [vmem:[#allocation5 + $0x60] sm:$0xff]  ;;  %p1288_p8 = scmp.ne.s32.totalorder %s882_s19, %s1287_s26  ;;  %s1365_s13 = smov [#allocation7]  }
  0x4f   : > { %1065 = vmatprep.subr.mxu0 %v1361_v0  ;;  %v1563_v40 = vld [vmem:[#allocation5 + $0x38] sm:$0xff]  ;;  %v1568_v42 = vld [vmem:[#allocation5 + $0x10] sm:$0xff]  ;;  %v638_v47 = vld [vmem:[#allocation5 + $0x120] sm:$0xff]  ;;  %s1291_s27 = sshll.u32 %s1365_s13, 4  ;;  %s1292_s27 = int_to_ptr.vmem [resolvable:$false] %s1291_s27 }
  0x50   : > { %1066 = vmatpush3.msra.mxu0 %v175_v4  ;;  %v637_v48 = vld [vmem:[#allocation5 + $0xf8] sm:$0xff]  ;;  %v636_v49 = vld [vmem:[#allocation5 + $0xd0] sm:$0xff]  ;;  %v635_v50 = vld [vmem:[#allocation5 + $0xa8] sm:$0xff]  ;;  %p1289_p11 = pnand %p1288_p8, %p1673_p3  ;;  %s1293_s28 = scalar_lea.vmem %s1292_s27, 256 }
  0x51   : > { %1068 = vmatmul.mubr.msk.f32.vlgmr.msra.gmra.mxu0 %vm180_vm1, %v174_v5  ;;  %v634_v51 = vld [vmem:[#allocation5 + $0x80] sm:$0xff]  ;;  %v633_v52 = vld [vmem:[#allocation5 + $0x58] sm:$0xff]  ;;  %v632_v53 = vld [vmem:[#allocation5 + $0x30] sm:$0xff]  ;;  %p1294_p10 = scmp.lt.s32.totalorder %s882_s19, %s1292_s27  ;;  %p1295_p2 = scmp.lt.s32.totalorder %s1293_s28, %s1287_s26 }
  0x52   : > { %1086 = vmatprep.mubr.msk.f32.mxu0 %vm274_vm2, %v254_v6  ;;  %v631_v54 = vld [vmem:[#allocation5 + $0x8] sm:$0xff]  ;;  %p1290_p7 = pneg %p1289_p11 }
  0x53   : > { %p1296_p13 = por %p1295_p2, %p1294_p10 }
  0x55   : > { %p1297_p0 = pnand %p1296_p13, %p1290_p7 }
 0x111   : > { %v250_v8 = vpop.f32.mrf.mxu0 }
 0x112   : > { %v1511_v9 = vadd.f32 %v250_v8, %v179_v7 }
 0x113   : > { %v1069_v10 = vpop.f32.mrf.mxu0 }
 0x114   : > { %412 = vrot.lane.b32.xlu1 %v1511_v9, %s1363_s15  ;;  %271 = vrot.lane.b32.xlu0 %v1511_v9, %s1364_s17 }
 0x186   : > { %v413_v11 = vpop.permute.xlu1 %412  ;;  %v272_v12 = vpop.permute.xlu0 %271 }
 0x187   : > { %1070 = vmatprep.subr.mxu1 %v272_v12  ;;  %1084 = vmatprep.subr.mxu0 %v413_v11 }
 0x188   : > { %1071 = vmatpush3.msra.mxu1 %v272_v12  ;;  %1085 = vmatpush3.msra.mxu0 %v413_v11  ;;  %v791_v12 = vld [vmem:[#allocation5 + $0x90] sm:$0xff] }
 0x189   : > { %1073 = vmatmul.mubr.msk.f32.vlgmr.msra.gmra.mxu1 %vm274_vm2, %v255_v13  ;;  %1098 = vmatprep.subr.mxu1 %v1361_v0 }
 0x18a   : > { %1075 = vmatprep.mubr.msk.f32.mxu1 %vm274_vm2, %v256_v14  ;;  %1087 = vmatmul.mubr.msk.f32.vlgmr.msra.gmra.mxu0 %vm274_vm2, %v255_v13  ;;  %v790_v13 = vld [vmem:[#allocation5 + $0x68] sm:$0xff] }
 0x18b   : > { %1089 = vmatprep.mubr.msk.f32.mxu0 %vm274_vm2, %v256_v14  ;;  %1117 = vmatprep.subr.mxu0 %v1361_v0  ;;  %v789_v14 = vld [vmem:[#allocation5 + $0x40] sm:$0xff] }
 0x18c   : > { %1118 = vmatpush3.msra.mxu0 %v638_v47 }
 0x18d   : > { %1076 = vmatmul.mubr.msk.f32.gmra.mxu1 %vm274_vm2, %v257_v15  ;;  %1119 = vmatprep.subr.mxu0 %v1361_v0 }
 0x18e   : > { %1078 = vmatprep.mubr.msk.f32.mxu1 %vm274_vm2, %v258_v16  ;;  %1090 = vmatmul.mubr.msk.f32.gmra.mxu0 %vm274_vm2, %v257_v15 }
 0x18f   : > { %1092 = vmatprep.mubr.msk.f32.mxu0 %vm274_vm2, %v258_v16  ;;  %1120 = vmatpush3.msra.mxu0 %v637_v48 }
 0x190   : > { %1121 = vmatprep.subr.mxu0 %v1361_v0 }
 0x191   : > { %1079 = vmatmul.mubr.msk.f32.gmra.mxu1 %vm274_vm2, %v259_v17  ;;  %1122 = vmatpush3.msra.mxu0 %v636_v49 }
 0x192   : > { %1081 = vmatprep.mubr.msk.f32.mxu1 %vm274_vm2, %v260_v18  ;;  %1093 = vmatmul.mubr.msk.f32.gmra.mxu0 %vm274_vm2, %v259_v17 }
 0x193   : > { %1095 = vmatprep.mubr.msk.f32.mxu0 %vm274_vm2, %v260_v18  ;;  %1123 = vmatprep.subr.mxu0 %v1361_v0 }
 0x194   : > { %1124 = vmatpush3.msra.mxu0 %v635_v50 }
 0x195   : > { %1082 = vmatmul.mubr.msk.f32.gmra.mxu1 %vm274_vm2, %v261_v19  ;;  %1125 = vmatprep.subr.mxu0 %v1361_v0 }
 0x196   : > { %1114 = vmatprep.mubr.msk.f32.mxu1 %vm1362_vm0, %v1361_v0  ;;  %1096 = vmatmul.mubr.msk.f32.gmra.mxu0 %vm274_vm2, %v261_v19 }
 0x197   : > { %1133 = vmatprep.mubr.msk.f32.mxu0 %vm1362_vm0, %v1361_v0  ;;  %1126 = vmatpush3.msra.mxu0 %v634_v51 }
 0x198   : > { %1127 = vmatprep.subr.mxu0 %v1361_v0 }
 0x199   : > { %1128 = vmatpush3.msra.mxu0 %v633_v52 }
 0x19a   : > { %1129 = vmatprep.subr.mxu0 %v1361_v0 }
 0x19b   : > { %1130 = vmatpush3.msra.mxu0 %v632_v53 }
 0x19c   : > { %1131 = vmatprep.subr.mxu0 %v1361_v0 }
 0x19d   : > { %1132 = vmatpush3.msra.mxu0 %v631_v54 }
 0x19e   : > { %1136 = vmatprep.subr.mxu0 %v1361_v0 }
 0x249   : > { %v1074_v20 = vpop.f32.mrf.mxu1 }
 0x24a   : > { %v405_v41 = vmul.f32 %v1074_v20, %v1563_v40  ;;  %v1088_v55 = vpop.f32.mrf.mxu0  ;;  %v788_v20 = vld [vmem:[#allocation5 + $0x18] sm:$0xff] }
 0x24b   : > { %v365_v21 = vpop.f32.mrf.mxu1  ;;  %v521_v10 = vmul.f32 %v1088_v55, %v1563_v40 }
 0x24c   : > { %v404_v43 = vmul.f32 %v365_v21, %v1568_v42  ;;  %v481_v56 = vpop.f32.mrf.mxu0 }
 0x24d   : > { %v1077_v22 = vpop.f32.mrf.mxu1  ;;  %v520_v11 = vmul.f32 %v481_v56, %v1568_v42 }
 0x24e   : > { %v407_v37 = vmul.f32 %v1077_v22, %v1553_v36  ;;  %v1091_v57 = vpop.f32.mrf.mxu0 }
 0x24f   : > { %v375_v23 = vpop.f32.mrf.mxu1  ;;  %v523_v8 = vmul.f32 %v1091_v57, %v1553_v36 }
 0x250   : > { %v406_v39 = vmul.f32 %v375_v23, %v1558_v38  ;;  %v491_v58 = vpop.f32.mrf.mxu0  ;;  %v792_v23 = vld [vmem:[#allocation5 + $0xe0] sm:$0xff] }
 0x251   : > { %v1080_v24 = vpop.f32.mrf.mxu1 }
 0x252   : > { %v409_v33 = vmul.f32 %v1080_v24, %v1543_v32  ;;  %v1094_v62 = vpop.f32.mrf.mxu0 }
 0x253   : > { %v385_v25 = vpop.f32.mrf.mxu1  ;;  %v525_v6 = vmul.f32 %v1094_v62, %v1543_v32 }
 0x254   : > { %v408_v35 = vmul.f32 %v385_v25, %v1548_v34  ;;  %v501_v63 = vpop.f32.mrf.mxu0 }
 0x255   : > { %v1083_v27 = vpop.f32.mrf.mxu1  ;;  %v524_v7 = vmul.f32 %v501_v63, %v1548_v34 }
 0x256   : > { %v411_v28 = vmul.f32 %v1083_v27, %v1535_v26  ;;  %v1097_v1 = vpop.f32.mrf.mxu0 }
 0x257   : > { %v395_v30 = vpop.f32.mrf.mxu1  ;;  %v527_v3 = vmul.f32 %v1097_v1, %v1535_v26 }
 0x258   : > { %1099 = vmatpush3.xpose.msk.msra.mxu1 %vm180_vm1, %v411_v28  ;;  %v410_v31 = vmul.f32 %v395_v30, %v1538_v29  ;;  %v511_v2 = vpop.f32.mrf.mxu0 }
 0x259   : > { %1100 = vmatprep.subr.mxu1 %v1361_v0  ;;  %v526_v5 = vmul.f32 %v511_v2, %v1538_v29 }
 0x25c   : > { %1101 = vmatpush3.xpose.msk.msra.mxu1 %vm180_vm1, %v410_v31 }
 0x25d   : > { %1102 = vmatprep.subr.mxu1 %v1361_v0 }
 0x260   : > { %1103 = vmatpush3.xpose.msk.msra.mxu1 %vm180_vm1, %v409_v33 }
 0x261   : > { %1104 = vmatprep.subr.mxu1 %v1361_v0 }
 0x264   : > { %1105 = vmatpush3.xpose.msk.msra.mxu1 %vm180_vm1, %v408_v35 }
 0x265   : > { %1106 = vmatprep.subr.mxu1 %v1361_v0 }
 0x268   : > { %1107 = vmatpush3.xpose.msk.msra.mxu1 %vm180_vm1, %v407_v37 }
 0x269   : > { %1108 = vmatprep.subr.mxu1 %v1361_v0 }
 0x26c   : > { %1109 = vmatpush3.xpose.msk.msra.mxu1 %vm180_vm1, %v406_v39 }
 0x26d   : > { %1110 = vmatprep.subr.mxu1 %v1361_v0 }
 0x270   : > { %1111 = vmatpush3.xpose.msk.msra.mxu1 %vm180_vm1, %v405_v41 }
 0x271   : > { %1112 = vmatprep.subr.mxu1 %v1361_v0 }
 0x274   : > { %1113 = vmatpush3.xpose.msk.msra.mxu1 %vm180_vm1, %v404_v43 }
 0x275   : > { %1155 = vmatprep.subr.mxu1 %v1361_v0 }
 0x277   : > { %1115 = vmatmul.mubr.msk.f32.vlgmr.msra.gmra.mxu1 %vm180_vm1, %v1511_v9  ;;  %v522_v9 = vmul.f32 %v491_v58, %v1558_v38 }
 0x278   : > { %1163 = vmatprep.mubr.msk.f32.mxu1 %vm1362_vm0, %v1361_v0  ;;  %1156 = vmatpush3.msra.mxu1 %v791_v12 }
 0x279   : > { %1157 = vmatprep.subr.mxu1 %v1361_v0 }
 0x27a   : > { %1158 = vmatpush3.msra.mxu1 %v790_v13 }
 0x27b   : > { %1159 = vmatprep.subr.mxu1 %v1361_v0 }
 0x27c   : > { %1160 = vmatpush3.msra.mxu1 %v789_v14 }
 0x27d   : > { %1161 = vmatprep.subr.mxu1 %v1361_v0 }
 0x27e   : > { %1162 = vmatpush3.msra.mxu1 %v788_v20 }
 0x337   : > { %v620_v44 = vpop.f32.mrf.mxu1 }
 0x338   : > { %v625_v45 = vsel %vm624_vm3, %v620_v44, -inf }
 0x339   : > { %626 = vmax.xlane.f32.xlu0 %v625_v45  ;;  %v1116_v46 = vpop.f32.mrf.mxu1 }
 0x3c2   : > { %v627_v59 = vpop.xlane.xlu0 %626 }
 0x3c3   : > { %v628_v60 = vsub.f32 %v620_v44, %v627_v59 }
 0x3c5   : > { %v629_v61 = vmul.f32 1.442695, %v628_v60 }
 0x3c7   : > { %1229 = vpow2.f32 %v629_v61 }
 0x3d4   : > { %v1230_v4 = vpop.eup %1229 }
 0x3d5   : > { %1134 = vmatmul.mubr.msk.f32.vlgmr.msra.gmra.mxu0 %vm624_vm3, %v1230_v4 }
 0x3d6   : > { %1137 = vmatpush3.msra.mxu0 %v527_v3  ;;  %1152 = vmatprep.mubr.msk.f32.mxu0 %vm1362_vm0, %v1361_v0 }
 0x3d7   : > { %1138 = vmatprep.subr.mxu0 %v1361_v0 }
 0x3d8   : > { %1139 = vmatpush3.msra.mxu0 %v526_v5 }
 0x3d9   : > { %1140 = vmatprep.subr.mxu0 %v1361_v0 }
 0x3da   : > { %1141 = vmatpush3.msra.mxu0 %v525_v6 }
 0x3db   : > { %1142 = vmatprep.subr.mxu0 %v1361_v0 }
 0x3dc   : > { %1143 = vmatpush3.msra.mxu0 %v524_v7 }
 0x3dd   : > { %1144 = vmatprep.subr.mxu0 %v1361_v0 }
 0x3de   : > { %1145 = vmatpush3.msra.mxu0 %v523_v8 }
 0x3df   : > { %1146 = vmatprep.subr.mxu0 %v1361_v0 }
 0x3e0   : > { %1147 = vmatpush3.msra.mxu0 %v522_v9 }
 0x3e1   : > { %1148 = vmatprep.subr.mxu0 %v1361_v0 }
 0x3e2   : > { %1149 = vmatpush3.msra.mxu0 %v521_v10 }
 0x3e3   : > { %1150 = vmatprep.subr.mxu0 %v1361_v0 }
 0x3e4   : > { %1151 = vmatpush3.msra.mxu0 %v520_v11 }
 0x495   : > { %v708_v15 = vpop.f32.mrf.mxu0 }
 0x496   : > { %v712_v16 = vmax.f32 %v708_v15, 1e-30 }
 0x497   : > { %v1135_v17 = vpop.f32.mrf.mxu0 }
 0x498   : > { %1231 = vrcp.f32 %v712_v16 }
 0x4a5   : > { %v1232_v18 = vpop.eup %1231 }
 0x4a6   : > { %v714_v19 = vmul.f32 %v1232_v18, %v1230_v4 }
 0x4a8   : > { %1153 = vmatmul.mubr.msk.f32.vlgmr.msra.gmra.mxu0 %vm624_vm3, %v714_v19 }
 0x568   : > { %v784_v21 = vpop.f32.mrf.mxu0 }
 0x569   : > { %1164 = vmatmul.mubr.msk.f32.vlgmr.msra.gmra.mxu1 %vm180_vm1, %v784_v21 }
 0x56a   : > { %v1154_v22 = vpop.f32.mrf.mxu0 }
 0x629   : > { %v862_v0 = vpop.f32.mrf.mxu1 }
 0x62a   : > { %v863_v24 = vadd.f32 %v862_v0, %v792_v23 }
 0x62b   : > { %v1165_v25 = vpop.f32.mrf.mxu1 }
 0x62c   : > { %866 = vst.msk [vmem:[%s173_s18] sm:$0xff] %vm180_vm1, %v863_v24 }
 0x62d   : > { %1300 = shalt.err (!%p1297_p0)
}
 0x62e   : > { %s1301_s3 = scalar_lea.hbm %s1617_s24, 128  ;;  %s1305_s6 = scalar_lea.hbm %s1657_s2, 256 }
 0x62f   : > { %p1302_p5 = scmp.ne.s32.totalorder %s1617_s24, %s1301_s3  ;;  %p1306_p1 = scmp.lt.s32.totalorder %s1617_s24, %s1657_s2 }
 0x630   : > { %p1307_p4 = scmp.lt.s32.totalorder %s1305_s6, %s1301_s3 }
 0x631   : > { %p1303_p9 = pnand %p1302_p5, %p1673_p3 }
 0x632   : > { %p1308_p6 = por %p1307_p4, %p1306_p1 }
 0x633   : > { %p1304_p12 = pneg %p1303_p9 }
 0x635   : > { %p1309_p8 = pnand %p1308_p6, %p1304_p12 }
 0x637   : > { %1312 = shalt.err (!%p1309_p8)
}
 0x638   : > { %1172 = dma.vmem_to_hbm [thread:$0]  (%p1673_p3), %s882_s19, 128, %s1617_s24, %s868_s25  }
 0x639 PF: > { %s893_s22 = sand.u32 1, %s1343_s9   ;;  %p1674_p11 = scmp.ne.s32.totalorder %s1663_s16, 0 }
 0x63a   : > { %p1675_p7 = scmp.ge.s32.totalorder %s1355_s12, 2  ;;  %s894_s15 = scalar_lea.sflag [#allocation4], %s893_s22 }
 0x63c   : > { %p1183_p10 = pnand %p1675_p7, %p1674_p11 }
 0x63e   : > { %p1184_p2 = pneg %p1183_p10 }
 0x640   : > { %1338 = dma.done.wait (%p1184_p2), %s894_s15, 128  }
 0x641   : > { %1340 = vsyncadd (%p1184_p2), %s894_s15, 4294967168  ;;  %p16_p13 = scmp.ge.s32.totalorder %s1435_s21, 4   ;;  %s1676_s9 = smov %s1347_s10 }
 0x642   : > { %s1677_s10 = smov %s1351_s11  ;;  %s1678_s11 = smov %s1452_s29 }
 0x643   : > { %s1679_s12 = smov %s1435_s21  ;;  %18 = sbr.rel (!%p16_p13) target bundleno = 6 (0x6), region = 77 }
 0x648   :  { %899 = vsyncpa [#allocation3], 1 }
 0x649   :  { %901 = vsyncpa [#allocation3 + $0x1], 1 }
 0x64a   :  { %902 = vsyncpa [#allocation6], 1 }
 0x64b   :  { %903 = vsyncpa [#allocation4], 1 }
 0x64c   :  { %905 = vsyncpa [#allocation4 + $0x1], 1 }

</bundles_post_ra>
